<compile_context>
chip_gen: v6e
topology: v6e:2x2x1
jax: 0.10.0
libtpu: 0.0.40
codegen_flags: <defaults>
</compile_context>

<pallas_src>
import functools

import jax
import jax.numpy as jnp
from jax.experimental import pallas as pl
from jax.experimental.pallas import tpu as pltpu

# gray_coeffs = [65.738, 129.057, 25.064] / 256  (GradLayer.get_gray)
_GRAY_COEFFS = (65.738 / 256.0, 129.057 / 256.0, 25.064 / 256.0)
_EPS = 1e-6

# Scoped-VMEM request: above every default scoped limit, below every
# generation's physical per-TC VMEM.
_VMEM_LIMIT_BYTES = 32 * 1024 * 1024
# Budget for the estimated per-grid-step working set (double-buffered blocks,
# halo windows and in-kernel temporaries).  Conservative for v5e / v7x.
_DEFAULT_BUDGET_BYTES = 12 * 1024 * 1024
# Max batch elements folded into one block (per-step overhead amortization).
_MAX_BATCH_BLOCK = 8


# ---------------------------------------------------------------------------
# In-kernel helpers (all math is on 2-D (rows, lanes) tiles: proven patterns).
# ---------------------------------------------------------------------------

def _to_gray(ref, b, lo, hi):
    """Gray strip (hi-lo, W) of batch element `b`, rows [lo, hi) of a
    (NB, C, R, W) block ref.  Three VPU fmas for C == 3."""
    if ref.shape[1] == 3:
        return (ref[b, 0, lo:hi, :] * _GRAY_COEFFS[0]
                + ref[b, 1, lo:hi, :] * _GRAY_COEFFS[1]
                + ref[b, 2, lo:hi, :] * _GRAY_COEFFS[2])
    return ref[b, 0, lo:hi, :]


def _row_grad(gc, ga, gb):
    """x_h = gray[i-1, j] - gray[i+1, j] over a (TH, W) strip.  ga / gb are the
    (1, W) rows just above / below the strip (already zeroed at image edges)."""
    TH, W = gc.shape
    if TH == 1:
        return ga - gb
    if TH % 8 == 0:
        # Sublane rotations ride the XLU; only the two wrap rows need fixing.
        up = pltpu.roll(gc, 1, 0)         # row r -> gray[r-1]    (row 0 wraps)
        dn = pltpu.roll(gc, TH - 1, 0)    # row r -> gray[r+1]    (last row wraps)
        row = jax.lax.broadcasted_iota(jnp.int32, (TH, W), 0)
        up = jnp.where(row == 0, ga, up)
        dn = jnp.where(row == TH - 1, gb, dn)
        return up - dn
    # Sublane-misaligned strip heights: shifted-concatenate fallback.
    up = jnp.concatenate([ga, gc[:-1, :]], axis=0)
    dn = jnp.concatenate([gc[1:, :], gb], axis=0)
    return up - dn


def _col_grad(gc):
    """x_v = gray[i, j+1] - gray[i, j-1] with zero padding at j = 0 / W-1."""
    TH, W = gc.shape
    if W == 1:
        return jnp.zeros_like(gc)
    if W % 128 == 0:
        # Lane rotations on the XLU; overwrite the two wrap columns.
        nxt = pltpu.roll(gc, W - 1, 1)    # lane j -> gray[j+1]   (last lane wraps)
        prv = pltpu.roll(gc, 1, 1)        # lane j -> gray[j-1]   (lane 0 wraps)
        col = jax.lax.broadcasted_iota(jnp.int32, (TH, W), 1)
        return jnp.where(col == 0, nxt,
                         jnp.where(col == W - 1, -prv, nxt - prv))
    zcol = jnp.zeros((TH, 1), gc.dtype)
    return (jnp.concatenate([gc[:, 1:], zcol], axis=1)
            - jnp.concatenate([zcol, gc[:, :-1]], axis=1))


# ---------------------------------------------------------------------------
# Kernels.
# ---------------------------------------------------------------------------

def _grad_single_strip_kernel(x_ref, o_ref):
    """Whole image per block, no halo inputs.  x_ref: (NB, C, H, W),
    o_ref: (NB, H, W)."""
    NB, _, TH, W = x_ref.shape
    zrow = jnp.zeros((1, W), x_ref.dtype)
    for b in range(NB):                        # NB is small & static: unrolled
        gc = _to_gray(x_ref, b, 0, TH)
        x_h = _row_grad(gc, zrow, zrow)        # image top/bottom: zero padding
        x_v = _col_grad(gc)
        o_ref[b] = jnp.sqrt(x_v * x_v + x_h * x_h + _EPS)


def _grad_multi_strip_kernel(xc_ref, xa_ref, xb_ref, o_ref):
    """Row strip with 1-row vertical halos fetched as 8-row windows.
    xc_ref: (NB, C, TH, W) rows [h*TH, (h+1)*TH)
    xa_ref: (NB, C, 8, W)  window whose LAST  row is global row h*TH - 1
    xb_ref: (NB, C, 8, W)  window whose FIRST row is global row (h+1)*TH
    o_ref : (NB, TH, W)
    """
    NB, _, TH, _ = xc_ref.shape
    above_off = xa_ref.shape[2] - 1
    h = pl.program_id(1)
    at_top = h == 0
    at_bottom = h == pl.num_programs(1) - 1
    for b in range(NB):
        gc = _to_gray(xc_ref, b, 0, TH)                      # (TH, W)
        ga = _to_gray(xa_ref, b, above_off, above_off + 1)   # (1, W)
        gb = _to_gray(xb_ref, b, 0, 1)                       # (1, W)
        zrow = jnp.zeros_like(ga)
        ga = jnp.where(at_top, zrow, ga)        # conv padding=1 at image top
        gb = jnp.where(at_bottom, zrow, gb)     # ... and image bottom
        x_h = _row_grad(gc, ga, gb)
        x_v = _col_grad(gc)
        o_ref[b] = jnp.sqrt(x_v * x_v + x_h * x_h + _EPS)


def _grad_packed_kernel(x_ref, o_ref, *, width):
    """Lane-dense narrow-W path: k = KW // width original rows packed per lane
    row, so stores are full 128-lane vst.  x_ref: (NB, C, Hp, KW),
    o_ref: (NB, Hp, KW)."""
    NB, _, Hp, KW = x_ref.shape
    W = width
    col = jax.lax.broadcasted_iota(jnp.int32, (Hp, KW), 1)
    cmod = col % W
    for b in range(NB):
        gc = _to_gray(x_ref, b, 0, Hp)                       # (Hp, KW)

        # Horizontal gradient: original j+1 / j-1 are lanes c+1 / c-1; the
        # edges of every W-wide group are the conv zero-padding columns.
        nxt = pltpu.roll(gc, KW - 1, 1)                      # lane c -> gray[c+1]
        prv = pltpu.roll(gc, 1, 1)                           # lane c -> gray[c-1]
        x_v = jnp.where(cmod == 0, nxt,
                        jnp.where(cmod == W - 1, -prv, nxt - prv))

        # Vertical gradient: original rows i-1 / i+1 are lanes c-W / c+W,
        # except at the packing seams where they live in the neighbouring
        # packed row (and are zero at the image top / bottom).
        up_i = pltpu.roll(gc, W, 1)                          # lane c -> gray[c-W]
        dn_i = pltpu.roll(gc, KW - W, 1)                     # lane c -> gray[c+W]
        zrow = jnp.zeros((1, KW), gc.dtype)
        if Hp > 1:
            up_s = jnp.concatenate([zrow, up_i[:-1, :]], axis=0)
            dn_s = jnp.concatenate([dn_i[1:, :], zrow], axis=0)
        else:
            up_s, dn_s = zrow, zrow
        up = jnp.where(col < W, up_s, up_i)
        dn = jnp.where(col >= KW - W, dn_s, dn_i)
        x_h = up - dn

        o_ref[b] = jnp.sqrt(x_v * x_v + x_h * x_h + _EPS)


# ---------------------------------------------------------------------------
# Wrapper: path / tile selection.
# ---------------------------------------------------------------------------

def _largest_divisor_leq(n, cap):
    cap = max(1, min(n, int(cap)))
    for d in range(cap, 0, -1):
        if n % d == 0:
            return d
    return 1


def _round_up(v, m):
    return -(-v // m) * m


def _strip_bytes(nb, c, th, w, itemsize, halo):
    """Estimated per-grid-step VMEM working set: double-buffered input/output
    blocks, the two 8-row halo windows, and ~6 f32-sized temporaries."""
    total = 2 * nb * c * th * w * itemsize         # centre input (x2 pipeline)
    total += 2 * nb * th * w * itemsize            # output       (x2 pipeline)
    if halo:
        total += 2 * 2 * nb * c * 8 * w * itemsize
    total += 6 * nb * th * w * 4                   # gc / up / dn / x_v / x_h ...
    return total


def grad_layer(x, *, tile_h=None, batch_block=None, vmem_budget_bytes=None):
    """GradLayer forward.  x: (N, C, H, W), C in {1, 3} -> (N, 1, H, W)."""
    N, C, H, W = x.shape
    if C not in (1, 3):
        raise ValueError(f"GradLayer expects 1 or 3 input channels, got {C}")
    itemsize = x.dtype.itemsize
    budget = (_DEFAULT_BUDGET_BYTES if vmem_budget_bytes is None
              else int(vmem_budget_bytes))

    def pick_nb(per_image_bytes):
        if batch_block is not None:
            if N % batch_block:
                raise ValueError(f"batch_block={batch_block} must divide N={N}")
            return int(batch_block)
        cap = min(_MAX_BATCH_BLOCK, max(1, budget // max(per_image_bytes, 1)))
        if N >= 2:
            cap = min(cap, N // 2)   # keep >= 2 grid steps for v7x megacore
        return _largest_divisor_leq(N, cap)

    def mk_params(sem):
        return pltpu.CompilerParams(dimension_semantics=sem,
                                    vmem_limit_bytes=_VMEM_LIMIT_BYTES)

    # ---- Path 1: lane-dense packed layout for narrow W ---------------------
    # Outputs narrower than 128 lanes lower to masked vst.msk stores; pack
    # k = 128 // W rows per lane row so the last dim becomes full 128 lanes.
    if tile_h is None and W < 128 and 128 % W == 0 and H % (128 // W) == 0:
        k = 128 // W
        Hp, KW = H // k, k * W
        per_img = _strip_bytes(1, C, Hp, KW, itemsize, halo=False)
        if per_img <= budget:
            NB = pick_nb(per_img)
            # TODO(synk): an N == 1 packed image still runs as a single grid
            # step (one v7x TC); splitting would need packed-space halos and
            # is not worth it at these sizes.
            x_p = x.reshape(N, C, Hp, KW)           # contiguous: free reshape
            out = pl.pallas_call(
                functools.partial(_grad_packed_kernel, width=W),
                out_shape=jax.ShapeDtypeStruct((N, Hp, KW), x.dtype),
                grid=(N // NB,),
                in_specs=[pl.BlockSpec((NB, C, Hp, KW), lambda b: (b, 0, 0, 0))],
                out_specs=pl.BlockSpec((NB, Hp, KW), lambda b: (b, 0, 0)),
                compiler_params=mk_params(("parallel",)),
            )(x_p)
            return out.reshape(N, 1, H, W)

    # ---- Path 2/3: row-strip tiling -----------------------------------------
    if tile_h is not None:
        TH = int(tile_h)
        if H % TH:
            raise ValueError(f"tile_h={TH} must divide H={H}")
        n_strips = H // TH
        if n_strips > 1 and TH % 8:
            raise ValueError("multi-strip tiling requires tile_h % 8 == 0")
        H_pad = H
    elif _strip_bytes(1, C, H, W, itemsize, halo=False) <= budget:
        TH, n_strips, H_pad = H, 1, H
        # v7x megacore: avoid a 1-step grid when a cheap 2-way row split exists.
        if N == 1 and H >= 32 and H % 16 == 0:
            TH, n_strips = H // 2, 2
    else:
        # Strip height: largest multiple of 8 (capped at 1024 rows) whose
        # working set fits; pad H up to a multiple of it with zero rows (zero
        # rows reproduce conv padding=1 exactly; padded outputs are sliced off).
        cap_rows = min(1024, _round_up(H, 8))
        TH = 8
        for cand in range(8, cap_rows + 1, 8):
            if _strip_bytes(1, C, cand, W, itemsize, halo=True) <= budget:
                TH = cand
        H_pad = _round_up(H, TH)
        n_strips = H_pad // TH

    NB = pick_nb(_strip_bytes(1, C, TH, W, itemsize, halo=n_strips > 1))

    x_in = x
    if H_pad != H:
        x_in = jnp.pad(x, ((0, 0), (0, 0), (0, H_pad - H), (0, 0)))

    if n_strips == 1:
        out = pl.pallas_call(
            _grad_single_strip_kernel,
            out_shape=jax.ShapeDtypeStruct((N, H_pad, W), x.dtype),
            grid=(N // NB,),
            in_specs=[pl.BlockSpec((NB, C, H_pad, W), lambda b: (b, 0, 0, 0))],
            out_specs=pl.BlockSpec((NB, H_pad, W), lambda b: (b, 0, 0)),
            compiler_params=mk_params(("parallel",)),
        )(x_in)
    else:
        s = TH // 8                      # strip height in 8-row window units
        n_hblk = H_pad // 8
        above_map = lambda b, h: (b, 0, jnp.maximum(h * s - 1, 0), 0)
        below_map = lambda b, h: (b, 0, jnp.minimum((h + 1) * s, n_hblk - 1), 0)
        out = pl.pallas_call(
            _grad_multi_strip_kernel,
            out_shape=jax.ShapeDtypeStruct((N, H_pad, W), x.dtype),
            grid=(N // NB, n_strips),
            in_specs=[
                pl.BlockSpec((NB, C, TH, W), lambda b, h: (b, 0, h, 0)),
                pl.BlockSpec((NB, C, 8, W), above_map),
                pl.BlockSpec((NB, C, 8, W), below_map),
            ],
            out_specs=pl.BlockSpec((NB, TH, W), lambda b, h: (b, h, 0)),
            compiler_params=mk_params(("parallel", "parallel")),
        )(x_in, x_in, x_in)

    if H_pad != H:
        out = out[:, :H, :]
    return out.reshape(N, 1, H, W)


# ---------------------------------------------------------------------------
# Pure-JAX reference (mirrors the PyTorch forward) and self-checks.
# ---------------------------------------------------------------------------

def grad_layer_reference(x):
    if x.shape[1] == 3:
        coeffs = jnp.array(_GRAY_COEFFS, dtype=x.dtype).reshape(1, 3, 1, 1)
        x = (x * coeffs).sum(axis=1, keepdims=True)
    kv = jnp.array([[0, 0, 0], [-1, 0, 1], [0, 0, 0]], x.dtype).reshape(1, 1, 3, 3)
    kh = jnp.array([[0, 1, 0], [0, 0, 0], [0, -1, 0]], x.dtype).reshape(1, 1, 3, 3)
    dn = jax.lax.conv_dimension_numbers(x.shape, kv.shape, ("NCHW", "OIHW", "NCHW"))
    x_v = jax.lax.conv_general_dilated(x, kv, (1, 1), ((1, 1), (1, 1)),
                                       dimension_numbers=dn)
    x_h = jax.lax.conv_general_dilated(x, kh, (1, 1), ((1, 1), (1, 1)),
                                       dimension_numbers=dn)
    return jnp.sqrt(x_v ** 2 + x_h ** 2 + 1e-6)


if __name__ == "__main__":
    key = jax.random.PRNGKey(0)
    k1, k2, k3 = jax.random.split(key, 3)

    def check(out, ref, tag):
        assert out.shape == ref.shape, (tag, out.shape, ref.shape)
        assert jnp.allclose(out, ref, atol=1e-5, rtol=1e-5), \
            (tag, float(jnp.max(jnp.abs(out - ref))))

    # 1) RGB thumbnail, W=16 -> lane-dense packed path (8 rows per lane row).
    x_rgb = jax.random.uniform(k1, (2, 3, 16, 16), dtype=jnp.float32)
    ref = jax.block_until_ready(grad_layer_reference(x_rgb))
    out = jax.block_until_ready(grad_layer(x_rgb))
    check(out, ref, "packed narrow-W")

    # 2) Same input, explicit tile_h=8 -> multi-strip halo path (W%128 != 0
    #    concat x_v fallback), two batch steps x two strips.
    out = jax.block_until_ready(grad_layer(x_rgb, tile_h=8))
    check(out, ref, "multi-strip narrow-W")

    # 3) Single gray image, W=128 -> forced 2-strip split (v7x megacore) with
    #    lane-roll x_v and sublane-roll x_h.
    x_gray = jax.random.uniform(k2, (1, 1, 32, 128), dtype=jnp.float32)
    ref2 = jax.block_until_ready(grad_layer_reference(x_gray))
    out2 = jax.block_until_ready(grad_layer(x_gray))
    check(out2, ref2, "forced 2-strip W=128")

    # 4) Batch of RGB W=128 images -> single-strip no-halo path.
    x_b = jax.random.uniform(k3, (2, 3, 16, 128), dtype=jnp.float32)
    ref3 = jax.block_until_ready(grad_layer_reference(x_b))
    out3 = jax.block_until_ready(grad_layer(x_b))
    check(out3, ref3, "single-strip no-halo")

    # 5) Odd H with a tiny VMEM budget -> wrapper row padding + 8-row strips.
    x_odd = jax.random.uniform(k1, (1, 3, 20, 16), dtype=jnp.float32)
    ref4 = jax.block_until_ready(grad_layer_reference(x_odd))
    out4 = jax.block_until_ready(grad_layer(x_odd, vmem_budget_bytes=4096))
    check(out4, ref4, "odd-H padded strips")

    print("KERNEL_OK")
</pallas_src>

<mosaic_0001>
module attributes {stable_mosaic.version = 11 : i64} {
  func.func @_grad_packed_kernel(%arg0: i32, %arg1: memref<1x3x2x128xf32, #tpu.memory_space<vmem>>, %arg2: memref<1x2x128xf32, #tpu.memory_space<vmem>>) attributes {dimension_semantics = [#tpu.dimension_semantics<parallel>], iteration_bounds = array<i64: 2>, scalar_prefetch = 0 : i64, scratch_operands = 0 : i64, tpu.core_type = #tpu.core_type<tc>, window_params = [{transform_indices = @transform_0, window_bounds = array<i64: 1, 3, 2, 128>}, {transform_indices = @transform_1, window_bounds = array<i64: 1, 2, 128>}]} {
    %0 = tpu.iota {dimensions = array<i32: 1>} : vector<2x128xi32>
    %c16_i32 = arith.constant 16 : i32
    %c0_i32 = arith.constant 0 : i32
    %1 = arith.cmpi eq, %c16_i32, %c0_i32 : i32
    %c1_i32 = arith.constant 1 : i32
    %2 = arith.select %1, %c1_i32, %c16_i32 : i32
    %3 = vector.broadcast %2 : i32 to vector<2x128xi32>
    %4 = arith.remsi %0, %3 : vector<2x128xi32>
    %c0_i32_0 = arith.constant 0 : i32
    %5 = vector.broadcast %c0_i32_0 : i32 to vector<2x128xi32>
    %6 = arith.cmpi ne, %4, %5 : vector<2x128xi32>
    %c0_i32_1 = arith.constant 0 : i32
    %7 = vector.broadcast %c0_i32_1 : i32 to vector<2x128xi32>
    %8 = arith.cmpi slt, %4, %7 : vector<2x128xi32>
    %c0_i32_2 = arith.constant 0 : i32
    %9 = arith.cmpi slt, %2, %c0_i32_2 : i32
    %10 = vector.broadcast %9 : i1 to vector<2x128xi1>
    %11 = vector.broadcast %10 : vector<2x128xi1> to vector<2x128xi1>
    %12 = arith.xori %8, %11 : vector<2x128xi1>
    %13 = arith.andi %12, %6 : vector<2x128xi1>
    %14 = vector.broadcast %2 : i32 to vector<2x128xi32>
    %15 = arith.addi %4, %14 : vector<2x128xi32>
    %16 = arith.select %13, %15, %4 : vector<2x128xi1>, vector<2x128xi32>
    %c0 = arith.constant 0 : index
    %c0_3 = arith.constant 0 : index
    %c0_4 = arith.constant 0 : index
    %c0_5 = arith.constant 0 : index
    %17 = vector.load %arg1[%c0, %c0_3, %c0_4, %c0_5] : memref<1x3x2x128xf32, #tpu.memory_space<vmem>>, vector<1x1x2x128xf32>
    %18 = vector.shape_cast %17 : vector<1x1x2x128xf32> to vector<2x128xf32>
    %cst = arith.constant 0.256789058 : f32
    %19 = vector.broadcast %cst : f32 to vector<2x128xf32>
    %20 = arith.mulf %18, %19 : vector<2x128xf32>
    %c0_6 = arith.constant 0 : index
    %c1 = arith.constant 1 : index
    %c0_7 = arith.constant 0 : index
    %c0_8 = arith.constant 0 : index
    %21 = vector.load %arg1[%c0_6, %c1, %c0_7, %c0_8] : memref<1x3x2x128xf32, #tpu.memory_space<vmem>>, vector<1x1x2x128xf32>
    %22 = vector.shape_cast %21 : vector<1x1x2x128xf32> to vector<2x128xf32>
    %cst_9 = arith.constant 0.504128933 : f32
    %23 = vector.broadcast %cst_9 : f32 to vector<2x128xf32>
    %24 = arith.mulf %22, %23 : vector<2x128xf32>
    %25 = arith.addf %20, %24 : vector<2x128xf32>
    %c0_10 = arith.constant 0 : index
    %c2 = arith.constant 2 : index
    %c0_11 = arith.constant 0 : index
    %c0_12 = arith.constant 0 : index
    %26 = vector.load %arg1[%c0_10, %c2, %c0_11, %c0_12] : memref<1x3x2x128xf32, #tpu.memory_space<vmem>>, vector<1x1x2x128xf32>
    %27 = vector.shape_cast %26 : vector<1x1x2x128xf32> to vector<2x128xf32>
    %cst_13 = arith.constant 0.0979062467 : f32
    %28 = vector.broadcast %cst_13 : f32 to vector<2x128xf32>
    %29 = arith.mulf %27, %28 : vector<2x128xf32>
    %30 = arith.addf %25, %29 : vector<2x128xf32>
    %c127_i32 = arith.constant 127 : i32
    %31 = tpu.dynamic_rotate %30 by %c127_i32 dim 1 : vector<2x128xf32>, i32 -> vector<2x128xf32>
    %c1_i32_14 = arith.constant 1 : i32
    %32 = tpu.dynamic_rotate %30 by %c1_i32_14 dim 1 : vector<2x128xf32>, i32 -> vector<2x128xf32>
    %c0_i32_15 = arith.constant 0 : i32
    %33 = vector.broadcast %c0_i32_15 : i32 to vector<2x128xi32>
    %34 = arith.cmpi eq, %16, %33 : vector<2x128xi32>
    %c15_i32 = arith.constant 15 : i32
    %35 = vector.broadcast %c15_i32 : i32 to vector<2x128xi32>
    %36 = arith.cmpi eq, %16, %35 : vector<2x128xi32>
    %cst_16 = arith.constant 0.000000e+00 : f32
    %37 = vector.broadcast %cst_16 : f32 to vector<2x128xf32>
    %38 = arith.subf %37, %32 : vector<2x128xf32>
    %39 = arith.subf %31, %32 : vector<2x128xf32>
    %40 = arith.select %36, %38, %39 : vector<2x128xi1>, vector<2x128xf32>
    %41 = arith.select %34, %31, %40 : vector<2x128xi1>, vector<2x128xf32>
    %c16_i32_17 = arith.constant 16 : i32
    %42 = tpu.dynamic_rotate %30 by %c16_i32_17 dim 1 : vector<2x128xf32>, i32 -> vector<2x128xf32>
    %c112_i32 = arith.constant 112 : i32
    %43 = tpu.dynamic_rotate %30 by %c112_i32 dim 1 : vector<2x128xf32>, i32 -> vector<2x128xf32>
    %cst_18 = arith.constant 0.000000e+00 : f32
    %44 = vector.broadcast %cst_18 : f32 to vector<1x128xf32>
    %45 = vector.extract_strided_slice %42 {offsets = [0, 0], sizes = [1, 128], strides = [1, 1]} : vector<2x128xf32> to vector<1x128xf32>
    %46 = tpu.concatenate %44, %45 in 0 : vector<1x128xf32>, vector<1x128xf32> -> vector<2x128xf32>
    %47 = vector.extract_strided_slice %43 {offsets = [1, 0], sizes = [1, 128], strides = [1, 1]} : vector<2x128xf32> to vector<1x128xf32>
    %48 = tpu.concatenate %47, %44 in 0 : vector<1x128xf32>, vector<1x128xf32> -> vector<2x128xf32>
    %c16_i32_19 = arith.constant 16 : i32
    %49 = vector.broadcast %c16_i32_19 : i32 to vector<2x128xi32>
    %50 = arith.cmpi slt, %0, %49 : vector<2x128xi32>
    %51 = arith.select %50, %46, %42 : vector<2x128xi1>, vector<2x128xf32>
    %c112_i32_20 = arith.constant 112 : i32
    %52 = vector.broadcast %c112_i32_20 : i32 to vector<2x128xi32>
    %53 = arith.cmpi sge, %0, %52 : vector<2x128xi32>
    %54 = arith.select %53, %48, %43 : vector<2x128xi1>, vector<2x128xf32>
    %55 = arith.subf %51, %54 : vector<2x128xf32>
    %56 = arith.mulf %41, %41 : vector<2x128xf32>
    %57 = arith.mulf %55, %55 : vector<2x128xf32>
    %58 = arith.addf %56, %57 : vector<2x128xf32>
    %cst_21 = arith.constant 9.99999997E-7 : f32
    %59 = vector.broadcast %cst_21 : f32 to vector<2x128xf32>
    %60 = arith.addf %58, %59 : vector<2x128xf32>
    %61 = math.sqrt %60 : vector<2x128xf32>
    %c0_22 = arith.constant 0 : index
    %c0_23 = arith.constant 0 : index
    %c0_24 = arith.constant 0 : index
    %62 = vector.load %arg2[%c0_22, %c0_23, %c0_24] : memref<1x2x128xf32, #tpu.memory_space<vmem>>, vector<1x2x128xf32>
    %63 = vector.shape_cast %62 : vector<1x2x128xf32> to vector<2x128xf32>
    %64 = vector.shape_cast %61 : vector<2x128xf32> to vector<1x2x128xf32>
    tpu.vector_store %arg2[%c0_22, %c0_23, %c0_24], %64 {strides = array<i32>} : memref<1x2x128xf32, #tpu.memory_space<vmem>>, vector<1x2x128xf32>,
    return
  }
  func.func @transform_0(%arg0: i32) -> (i32, i32, i32, i32) {
    %c0_i32 = arith.constant 0 : i32
    %c0_i32_0 = arith.constant 0 : i32
    %c0_i32_1 = arith.constant 0 : i32
    %c0_i32_2 = arith.constant 0 : i32
    return %arg0, %c0_i32, %c0_i32_0, %c0_i32_1 : i32, i32, i32, i32
  }
  func.func @transform_1(%arg0: i32) -> (i32, i32, i32) {
    %c0_i32 = arith.constant 0 : i32
    %c0_i32_0 = arith.constant 0 : i32
    %c0_i32_1 = arith.constant 0 : i32
    return %arg0, %c0_i32, %c0_i32_0 : i32, i32, i32
  }
}

</mosaic_0001>

<bundles_post_ra>
// kernel: tpu_custom_call.1
= control target key start
LH: loop header
LB: loop body
LE: loop exit
PB: predicated region body
PF: predicated region fallthrough
CT: control target
= control target key end

     0   :  { %6 = vsyncpa [#allocation3], 0  ;;  %s605_s0 = inlined_call_operand.hbm [shape: f32[2,3,2,128], index: 0, kind: input, shape index: {}]   ;;  %s606_s1 = inlined_call_operand.hbm [shape: f32[2,2,128], index: 1, kind: output, shape index: {}]  }
   0x1   :  { %8 = vsyncpa [#allocation3 + $0x1], 0 }
   0x2   :  { %9 = vsyncpa [#allocation4], 0 }
   0x3   :  { %11 = vsyncpa [#allocation4 + $0x1], 0  ;;  %s464_s6 = smov 0   ;;  %s466_s7 = smov 0  }
   0x4   :  { %s468_s8 = smov 0   ;;  %s470_s9 = smov 0  }
   0x5 LB: > { %s485_s10 = sadd.s32 4294967295, %s444_s9   ;;  %s283_s11 = sadd.s32 4294967294, %s444_s9   ;;  %s444_s9 = sphi %s470_s9, %s620_s9   ;;  %s440_s8 = sphi %s468_s8, %s619_s8   ;;  %s436_s7 = sphi %s466_s7, %s618_s7   ;;  %s432_s6 = sphi %s464_s6, %s617_s6  }
   0x6   : > { %s489_s12 = sadd.s32 1, %s444_s9   ;;  %s24_s13 = sadd.s32 1, %s440_s8 }
   0x7   : > { %s21_s14 = ssub.s32 %s444_s9, %s489_s12  ;;  %p31_p0 = scmp.ne.s32.totalorder %s440_s8, %s436_s7 }
   0x8   : > { %p22_p1 = scmp.eq.s32.totalorder %s21_s14, 0  ;;  %p32_p2 = scmp.eq.s32.totalorder %s444_s9, 0 }
   0x9   : > { %p37_p3 = scmp.ne.s32.totalorder %s436_s7, %s432_s6  ;;  %p38_p4 = scmp.eq.s32.totalorder %s485_s10, 0 }
   0xa   : > { %s501_s15 = scalar_select %p22_p1, %s440_s8, %s24_s13  }
   0xb   : > { %p33_p5 = por %p32_p2, %p31_p0  ;;  %p503_p6 = por %p38_p4, %p37_p3 }
   0xc   : > { %p61_p7 = scmp.eq.s32.totalorder %s485_s10, 1  ;;  %p67_p8 = scmp.eq.s32.totalorder %s283_s11, 1 }
   0xd   : > { %s609_s16 = scalar_select %p503_p6, 1, 0 }
   0xe   : > { %p310_p10 = scmp.lt.s32.totalorder %s444_s9, 2  ;;  %p510_p11 = por %p61_p7, %p31_p0 }
   0xf   : > { %p514_p12 = por %p67_p8, %p37_p3  ;;  %s87_s19 = sand.u32 1, %s440_s8  }
  0x10   : > { %s610_s17 = scalar_select %p510_p11, 1, 0 }
  0x11   : > { %s611_s18 = scalar_select %p514_p12, 1, 0 }
  0x12   : > { %s296_s20 = smul.u32 96, %s444_s9  ;;  %p525_p13 = pnand %p310_p10, %p33_p5 }
  0x13   : > { %s295_s21 = smul.u32 6, %s87_s19  ;;  %s531_s28 = scalar_lea.sflag [#allocation3], %s87_s19 }
  0x14   : > { %s523_s24 = scalar_lea.hbm %s605_s0, %s296_s20  ;;  %p354_p1 = pneg %p525_p13 }
  0x15   : > { %s91_s26 = scalar_lea.vmem [#allocation2], %s295_s21  ;;  %s352_s29 = scalar_lea.hbm %s523_s24, 96 }
  0x16   : > { %s98_s27 = sshll.u32 %s91_s26, 4  ;;  %p353_p0 = scmp.ne.s32.totalorder %s523_s24, %s352_s29  ;;  %s529_s27 = int_to_ptr.vmem [resolvable:$true] %s98_s27 }
  0x17   : > { %s357_s3 = scalar_lea.hbm %s605_s0, 192  ;;  %p358_p4 = scmp.lt.s32.totalorder %s523_s24, %s605_s0 }
  0x18   : > { %p355_p2 = pnand %p354_p1, %p353_p0  ;;  %p359_p5 = scmp.lt.s32.totalorder %s357_s3, %s352_s29 }
  0x1a   : > { %p356_p3 = pneg %p355_p2  ;;  %p360_p7 = por %p359_p5, %p358_p4 }
  0x1c   : > { %p361_p8 = pnand %p360_p7, %p356_p3 }
  0x1e   : > { %364 = shalt.err (!%p361_p8)
}
  0x1f   : > { %s365_s11 = scalar_lea.vmem %s529_s27, 96  ;;  %s446_s13 = smov [#allocation2]  }
  0x20   : > { %p366_p10 = scmp.ne.s32.totalorder %s529_s27, %s365_s11  ;;  %s370_s14 = sshll.u32 %s446_s13, 4  ;;  %s371_s14 = int_to_ptr.vmem [resolvable:$false] %s370_s14 }
  0x21   : > { %s372_s19 = scalar_lea.vmem %s371_s14, 192  ;;  %p373_p2 = scmp.lt.s32.totalorder %s529_s27, %s371_s14 }
  0x22   : > { %p368_p9 = pnand %p366_p10, %p354_p1  ;;  %p374_p12 = scmp.lt.s32.totalorder %s372_s19, %s365_s11 }
  0x24   : > { %p369_p0 = pneg %p368_p9  ;;  %p375_p11 = por %p374_p12, %p373_p2 }
  0x26   : > { %p376_p6 = pnand %p375_p11, %p369_p0 }
  0x28   : > { %379 = shalt.err (!%p376_p6)
}
  0x29   : > { %s447_s20 = smov 32   ;;  %s448_s21 = smov 2  }
  0x2a   : > { %305 = dma.hbm_to_vmem [thread:$0]  (!%p525_p13), %s523_s24, 96, %s529_s27, %s531_s28, %s447_s20, %s447_s20, %s448_s21  }
  0x2b   : > { %p287_p9 = scmp.ge.s32.totalorder %s444_s9, 1  ;;  %p106_p1 = scmp.lt.s32.totalorder %s444_s9, 3 }
  0x2d   : > { %p107_p3 = pnand %p287_p9, %p106_p1 }
  0x2e   : > { %s555_s22 = sand.u32 (!%p107_p3), 1, %s436_s7   ;;  %p613_p6 = scmp.ne.s32.totalorder (!%p107_p3), %s609_s16, 0 }
  0x2f   : > { %110 = sbr.rel (%p107_p3) target bundleno = 222 (0xde), region = 24  ;;  %s113_s26 = scalar_lea.sflag (!%p107_p3), [#allocation3], %s555_s22 }
  0x30   : > { %s297_s23 = smul.u32 (!%p107_p3), 6, %s555_s22 }
  0x32   : > { %s116_s29 = scalar_lea.vmem (!%p107_p3), [#allocation2], %s297_s23 }
  0x34   : > { %423 = dma.done.wait (%p613_p6), %s113_s26, 96  }
  0x35   : > { %425 = vsyncadd (%p613_p6), %s113_s26, 4294967200  ;;  %v149_v0 = vld [vmem:[%s116_s29] sm:$0x3]  ;;  %v289_v1 = vld [vmem:[%s116_s29 + $0x2] sm:$0x3]  ;;  %s449_s24 = smov 127   ;;  %v135_v8 = vlaneseq }
  0x36   : > { %v290_v2 = vld [vmem:[%s116_s29 + $0x4] sm:$0x3]  ;;  %v150_v3 = vmul.f32 0.25678906, %v149_v0  ;;  %v153_v4 = vmul.f32 0.50412893, %v289_v1 }
  0x37   : > { %v157_v5 = vmul.f32 0.09790625, %v290_v2  ;;  %s450_s25 = smov 16   ;;  %s451_s27 = smov 1   ;;  %v136_v9 = vand.u32 127, %v135_v8  ;;  %vm176_vm0 = vcmask 1040384  }
  0x38   : > { %v154_v6 = vadd.f32 %v153_v4, %v150_v3  ;;  %s452_s28 = smov 112   ;;  %s288_s16 = sshll.u32 %s555_s22, 1 }
  0x39   : > { %v141_v12 = vand.u32 15, %v136_v9  ;;  %vm182_vm1 = vcmp.lt.s32.totalorder %v136_v9, 16  ;;  %vm184_vm4 = vcmp.ge.s32.totalorder %v136_v9, 112  ;;  %s292_s30 = sshll.u32 %s485_s10, 5  ;;  %s134_s2 = scalar_lea.vmem [#allocation5], %s288_s16 }
  0x3a   : > { %v158_v7 = vadd.f32 %v157_v5, %v154_v6  ;;  %s213_s3 = sshll.u32 %s134_s2, 4  ;;  %s568_s11 = scalar_lea.hbm %s606_s1, %s292_s30  ;;  %s214_s3 = int_to_ptr.vmem [resolvable:$true] %s213_s3 }
  0x3b   : > { %vm163_vm2 = vcmp.eq.s32.totalorder %v141_v12, 0  ;;  %vm164_vm3 = vcmp.eq.s32.totalorder %v141_v12, 15  ;;  %s200_s13 = scalar_lea.sflag [#allocation4], %s555_s22  ;;  %s380_s14 = scalar_lea.vmem %s214_s3, 32 }
  0x3c   : > { %159 = vrot.lane.b32.xlu1 %v158_v7, %s449_s24  ;;  %169 = vrot.lane.b32.xlu0 %v158_v7, %s450_s25  ;;  %p381_p11 = scmp.ne.s32.totalorder %s214_s3, %s380_s14  ;;  %p614_p12 = scmp.ne.s32.totalorder %s610_s17, 0 }
  0x3d   : > { %s453_s10 = smov [#allocation5]  }
  0x3e   : > { %p382_p13 = pnand %p381_p11, %p614_p12  ;;  %s384_s19 = sshll.u32 %s453_s10, 4  ;;  %s385_s19 = int_to_ptr.vmem [resolvable:$false] %s384_s19 }
  0x3f   : > { %s386_s20 = scalar_lea.vmem %s385_s19, 64  ;;  %p387_p5 = scmp.lt.s32.totalorder %s214_s3, %s385_s19 }
  0x40   : > { %161 = vrot.lane.b32.xlu1 %v158_v7, %s451_s27  ;;  %171 = vrot.lane.b32.xlu0 %v158_v7, %s452_s28  ;;  %p383_p4 = pneg %p382_p13  ;;  %p388_p7 = scmp.lt.s32.totalorder %s386_s20, %s380_s14 }
  0x42   : > { %p389_p8 = por %p388_p7, %p387_p5 }
  0x44   : > { %p390_p10 = pnand %p389_p8, %p383_p4 }
  0xae   : > { %v160_v10 = vpop.permute.xlu1 %159  ;;  %v170_v11 = vpop.permute.xlu0 %169 }
  0xaf   : > { %v174_v13 = vrot.slane %v170_v11, 7 }
  0xb1   : > { %v177_v16 = vsel %vm176_vm0, 0.0, %v174_v13 }
  0xb2   : > { %v162_v14 = vpop.permute.xlu1 %161  ;;  %v172_v15 = vpop.permute.xlu0 %171  ;;  %v183_v22 = vsel %vm182_vm1, %v177_v16, %v170_v11 }
  0xb3   : > { %v165_v17 = vsub.f32 0.0, %v162_v14  ;;  %v166_v18 = vsub.f32 %v160_v10, %v162_v14  ;;  %v179_v19 = vrot.slane %v172_v15, 1 }
  0xb5   : > { %v167_v20 = vsel %vm164_vm3, %v165_v17, %v166_v18  ;;  %v181_v21 = vsel %vm176_vm0, %v179_v19, 0.0 }
  0xb6   : > { %v168_v23 = vsel %vm163_vm2, %v160_v10, %v167_v20  ;;  %v185_v24 = vsel %vm184_vm4, %v181_v21, %v172_v15 }
  0xb7   : > { %v186_v25 = vsub.f32 %v183_v22, %v185_v24  ;;  %v187_v26 = vmul.f32 %v168_v23, %v168_v23 }
  0xb9   : > { %v188_v27 = vmul.f32 %v186_v25, %v186_v25 }
  0xbb   : > { %v189_v28 = vadd.f32 %v188_v27, %v187_v26 }
  0xbd   : > { %v190_v29 = vadd.f32 1e-06, %v189_v28 }
  0xbf   : > { %350 = vrsqrt.f32 %v190_v29  ;;  %vm193_vm5 = vcmp.eq.f32.partialorder %v190_v29, inf  ;;  %v196_v32 = vand.u32 2147483648, %v190_v29  ;;  %vm195_vm6 = vcmp.eq.f32.partialorder %v190_v29, 0.0 }
  0xcc   : > { %v351_v30 = vpop.eup %350 }
  0xcd   : > { %v192_v31 = vmul.f32 %v351_v30, %v190_v29 }
  0xcf   : > { %v194_v33 = vsel %vm193_vm5, %v190_v29, %v192_v31 }
  0xd0   : > { %v197_v34 = vsel %vm195_vm6, %v196_v32, %v194_v33 }
  0xd1   : > { %198 = vst [vmem:[%s134_s2] sm:$0x3] %v197_v34 }
  0xd2   : > { %393 = shalt.err (!%p390_p10)
}
  0xd3   : > { %s394_s21 = scalar_lea.hbm %s568_s11, 32  ;;  %s398_s26 = scalar_lea.hbm %s606_s1, 64 }
  0xd4   : > { %p395_p0 = scmp.ne.s32.totalorder %s568_s11, %s394_s21  ;;  %p399_p1 = scmp.lt.s32.totalorder %s568_s11, %s606_s1 }
  0xd5   : > { %p400_p3 = scmp.lt.s32.totalorder %s398_s26, %s394_s21 }
  0xd6   : > { %p396_p2 = pnand %p395_p0, %p614_p12 }
  0xd7   : > { %p401_p6 = por %p400_p3, %p399_p1 }
  0xd8   : > { %p397_p9 = pneg %p396_p2 }
  0xda   : > { %p402_p11 = pnand %p401_p6, %p397_p9 }
  0xdc   : > { %405 = shalt.err (!%p402_p11)
}
  0xdd   : > { %300 = dma.vmem_to_hbm [thread:$0]  (%p614_p12), %s214_s3, 32, %s568_s11, %s200_s13  }
  0xde PF: > { %s225_s25 = sand.u32 1, %s432_s6   ;;  %p615_p13 = scmp.ne.s32.totalorder %s611_s18, 0 }
  0xdf   : > { %p616_p4 = scmp.ge.s32.totalorder %s444_s9, 2  ;;  %s226_s27 = scalar_lea.sflag [#allocation4], %s225_s25 }
  0xe1   : > { %p307_p5 = pnand %p616_p4, %p615_p13 }
  0xe3   : > { %p308_p7 = pneg %p307_p5 }
  0xe5   : > { %427 = dma.done.wait (%p308_p7), %s226_s27, 32  }
  0xe6   : > { %429 = vsyncadd (%p308_p7), %s226_s27, 4294967264  ;;  %p14_p8 = scmp.ge.s32.totalorder %s489_s12, 4   ;;  %s617_s6 = smov %s436_s7 }
  0xe7   : > { %s618_s7 = smov %s440_s8  ;;  %s619_s8 = smov %s501_s15 }
  0xe8   : > { %s620_s9 = smov %s489_s12  ;;  %16 = sbr.rel (!%p14_p8) target bundleno = 5 (0x5), region = 71 }
  0xed   :  { %231 = vsyncpa [#allocation3], 1 }
  0xee   :  { %233 = vsyncpa [#allocation3 + $0x1], 1 }
  0xef   :  { %234 = vsyncpa [#allocation4], 1 }
  0xf0   :  { %236 = vsyncpa [#allocation4 + $0x1], 1 }

</bundles_post_ra>
